<compile_context>
chip_gen: v7x
topology: tpu7x:2x2x1
jax: 0.10.0
libtpu: 0.0.40
codegen_flags: <defaults>
</compile_context>

<pallas_src>
import functools

import jax
import jax.numpy as jnp
from jax import lax
from jax.experimental import pallas as pl
from jax.experimental.pallas import tpu as pltpu


def _round_up(n, m):
    return ((n + m - 1) // m) * m


def _net_time_kernel(x_ref, w1_ref, b1_ref, w2_ref, b2_ref, w3_ref, b3_ref,
                     wh_ref, bh_ref, out_ref, *, N, d, slab_w, n_pad):
    f32, bf16 = jnp.float32, jnp.bfloat16
    c = d + 1
    path_w = (N + 1) * c
    bt = x_ref.shape[0]

    # ---- MLP trunk: bf16 MXU matmuls, f32 accumulation; bias + ReLU in f32 ----
    h = jnp.maximum(
        jnp.dot(x_ref[...].astype(bf16), w1_ref[...], preferred_element_type=f32)
        + b1_ref[...], 0.0)
    h = jnp.maximum(
        jnp.dot(h.astype(bf16), w2_ref[...], preferred_element_type=f32)
        + b2_ref[...], 0.0)
    h = jnp.maximum(
        jnp.dot(h.astype(bf16), w3_ref[...], preferred_element_type=f32)
        + b3_ref[...], 0.0)                                     # [bt, Hpad]

    # ---- single fused head matmul: [ path+level1 slab | prev slab | 0.5*delta slab ]
    head = jnp.dot(h.astype(bf16), wh_ref[...], preferred_element_type=f32) + bh_ref[...]
    slab = head[:, :slab_w]                                     # path + level-1 logsig
    prev = head[:, slab_w:slab_w + c * n_pad]                   # point before step (ch-major)
    dhal = head[:, slab_w + c * n_pad:]                         # 0.5 * step increment

    # ---- depth-2 log-signature, level 2 (Lyndon pairs i<j): Levy areas written
    #      into lanes path_w+c .. path_w+sig_len-1 via lane-broadcast selects ----
    lane = lax.broadcasted_iota(jnp.int32, (bt, slab_w), 1)
    t = path_w + c
    for i in range(c):
        p_i = prev[:, i * n_pad:(i + 1) * n_pad]                # 128-aligned slices
        d_i = dhal[:, i * n_pad:(i + 1) * n_pad]
        for j in range(i + 1, c):
            p_j = prev[:, j * n_pad:(j + 1) * n_pad]
            d_j = dhal[:, j * n_pad:(j + 1) * n_pad]
            levy = jnp.sum(p_i * d_j - p_j * d_i, axis=-1, keepdims=True)
            slab = jnp.where(lane == t, levy, slab)
            t += 1

    out_ref[...] = slab                                         # one lane-dense store


def _prepare_weights(params, N, d):
    """Pad/cast trunk weights and fold fc4+cumsum+time+level-1 into one head matmul.

    Head columns: [0, slab_w)                 path (col m*c+ch) then level-1 logsig, zero pad
                  [slab_w, slab_w + c*Npad)   prev:  col ch*Npad+k = path point before step k
                  [.., .. + c*Npad)           delta: col ch*Npad+k = 0.5 * increment of step k
    """
    f32, bf16 = jnp.float32, jnp.bfloat16
    c = d + 1
    sig_len = c + c * (c - 1) // 2
    H = 10 * N
    h_pad = _round_up(H, 128)
    n_pad = _round_up(N, 128)
    path_w = (N + 1) * c
    slab_w = _round_up(path_w + sig_len, 128)
    hid1 = _round_up(params["w1"].shape[1], 128)     # 200 -> 256
    hid2 = _round_up(params["w2"].shape[1], 128)     # 200 -> 256

    w4 = params["w4"].astype(f32)                    # [10, d]
    b4 = params["b4"].reshape(d).astype(f32)
    n_idx = jnp.arange(N, dtype=f32)
    m_idx = jnp.arange(N + 1, dtype=f32)

    # path row m (m>=1) spatial = sum_{n<m} fc4(h_n);  row 0 = 0;  time = m/N.
    causal = (n_idx[:, None] < m_idx[None, :]).astype(f32)               # [N, N+1]
    wp = jnp.zeros((N, 10, N + 1, c), f32)
    wp = wp.at[:, :, :, 1:].set(causal[:, None, :, None] * w4[None, :, None, :])
    wp = wp.reshape(H, path_w)
    bp = jnp.zeros((N + 1, c), f32)
    bp = bp.at[:, 0].set(m_idx / N)
    bp = bp.at[:, 1:].set(m_idx[:, None] * b4[None, :])
    bp = bp.reshape(path_w)

    # output slab = [ flattened path | level-1 logsig (= final path point) | zeros ]
    w_slab = jnp.zeros((H, slab_w), f32).at[:, :path_w].set(wp)
    w_slab = w_slab.at[:, path_w:path_w + c].set(wp[:, N * c:N * c + c])
    b_slab = jnp.zeros((slab_w,), f32).at[:path_w].set(bp)
    b_slab = b_slab.at[path_w:path_w + c].set(bp[N * c:N * c + c])

    # prev slab: exclusive cumsum (n < k); time = k/N; columns >= N are zero padding.
    strict = (n_idx[:, None] < n_idx[None, :]).astype(f32)               # [N, N]
    wq = jnp.zeros((N, 10, c, n_pad), f32)
    wq = wq.at[:, :, 1:, :N].set(strict[:, None, None, :] * w4[None, :, :, None])
    wq = wq.reshape(H, c * n_pad)
    bq = jnp.zeros((c, n_pad), f32)
    bq = bq.at[0, :N].set(n_idx / N)
    bq = bq.at[1:, :N].set(n_idx[None, :] * b4[:, None])
    bq = bq.reshape(c * n_pad)

    # delta slab with the 0.5 Levy factor folded in: 0.5*fc4(h_k); time inc 0.5/N.
    eye = jnp.eye(N, dtype=f32)
    wd = jnp.zeros((N, 10, c, n_pad), f32)
    wd = wd.at[:, :, 1:, :N].set(0.5 * eye[:, None, None, :] * w4[None, :, :, None])
    wd = wd.reshape(H, c * n_pad)
    bd = jnp.zeros((c, n_pad), f32)
    bd = bd.at[0, :N].set(0.5 / N)
    bd = bd.at[1:, :N].set(0.5 * jnp.broadcast_to(b4[:, None], (d, N)))
    bd = bd.reshape(c * n_pad)

    # one fused head: [slab | prev | delta]; rows padded 10N -> h_pad; bf16 weights.
    w_head = jnp.concatenate([w_slab, wq, wd], axis=1)
    w_head = jnp.pad(w_head, ((0, h_pad - H), (0, 0))).astype(bf16)
    b_head = jnp.concatenate([b_slab, bq, bd])[None, :]

    # trunk weights: zero-pad hidden/output widths to full MXU tiles, cast to bf16.
    p1, p2, p3 = hid1 - params["w1"].shape[1], hid2 - params["w2"].shape[1], h_pad - H
    w1 = jnp.pad(params["w1"].astype(f32), ((0, 0), (0, p1))).astype(bf16)
    b1 = jnp.pad(params["b1"].reshape(-1).astype(f32), (0, p1))[None, :]
    w2 = jnp.pad(params["w2"].astype(f32), ((0, p1), (0, p2))).astype(bf16)
    b2 = jnp.pad(params["b2"].reshape(-1).astype(f32), (0, p2))[None, :]
    w3 = jnp.pad(params["w3"].astype(f32), ((0, p2), (0, p3))).astype(bf16)
    b3 = jnp.pad(params["b3"].reshape(-1).astype(f32), (0, p3))[None, :]

    return [w1, b1, w2, b2, w3, b3, w_head, b_head], slab_w, n_pad


def net_time_forward(x, params, *, N, d, batch_tile=512):
    """Returns (path [B, N+1, d+1], logsig [B, sig_len]) matching Net_time.forward."""
    B, input_dim = x.shape
    c = d + 1
    sig_len = c + c * (c - 1) // 2
    path_w = (N + 1) * c

    w_in, slab_w, n_pad = _prepare_weights(params, N, d)

    # Batch tiling: sublane-aligned, >=2 grid steps when possible (both v7x TCs),
    # large tiles (default 512) to amortize per-step overhead.
    B8 = _round_up(max(B, 1), 8)
    bt = B8 if B8 < 16 else min(batch_tile, _round_up((B8 + 1) // 2, 8))
    B_pad = _round_up(B8, bt)
    xp = jnp.pad(x, ((0, B_pad - B), (0, 0))) if B_pad != B else x

    kernel = functools.partial(_net_time_kernel, N=N, d=d, slab_w=slab_w, n_pad=n_pad)
    resident = lambda i: (0, 0)     # weights stay VMEM-resident across batch tiles
    batched = lambda i: (i, 0)

    out = pl.pallas_call(
        kernel,
        grid=(B_pad // bt,),
        out_shape=jax.ShapeDtypeStruct((B_pad, slab_w), jnp.float32),
        in_specs=[pl.BlockSpec((bt, input_dim), batched)]
                 + [pl.BlockSpec(w.shape, resident) for w in w_in],
        out_specs=pl.BlockSpec((bt, slab_w), batched),
        compiler_params=pltpu.CompilerParams(
            dimension_semantics=("parallel",),
            vmem_limit_bytes=32 * 1024 * 1024),
    )(xp, *w_in)

    path = out[:B, :path_w].reshape(B, N + 1, c)   # row-major flat == [B, N+1, c]
    sig = out[:B, path_w:path_w + sig_len]
    return path, sig


def init_params(key, input_dim, N, d):
    """Deterministic nn.Linear-style init; weights stored as [in, out]."""
    dims = [(input_dim, 200), (200, 200), (200, N * 10), (10, d)]
    params = {}
    for idx, (fan_in, fan_out) in enumerate(dims, start=1):
        key, kw, kb = jax.random.split(key, 3)
        bound = 1.0 / (fan_in ** 0.5)
        params[f"w{idx}"] = jax.random.uniform(
            kw, (fan_in, fan_out), jnp.float32, -bound, bound)
        params[f"b{idx}"] = jax.random.uniform(
            kb, (1, fan_out), jnp.float32, -bound, bound)
    return params


def _reference_forward(x, params, *, N, d):
    """Pure-JAX (XLA, f32) reference mirroring the torch module (depth-2 logsig)."""
    f32 = jnp.float32
    B = x.shape[0]
    c = d + 1
    h = jnp.maximum(x @ params["w1"] + params["b1"], 0.0)
    h = jnp.maximum(h @ params["w2"] + params["b2"], 0.0)
    h = jnp.maximum(h @ params["w3"] + params["b3"], 0.0)
    y = h.reshape(B, N, 10) @ params["w4"] + params["b4"]
    xc = jnp.cumsum(y, axis=1)
    spatial = jnp.concatenate([jnp.zeros((B, 1, d), f32), xc], axis=1)
    t = jnp.broadcast_to(jnp.linspace(0.0, 1.0, N + 1)[None, :, None], (B, N + 1, 1))
    path = jnp.concatenate([t, spatial], axis=-1)
    prev, delta = path[:, :N, :], path[:, 1:, :] - path[:, :N, :]
    parts = [path[:, N, :]]
    for i in range(c):
        for j in range(i + 1, c):
            parts.append(0.5 * jnp.sum(prev[..., i] * delta[..., j]
                                       - prev[..., j] * delta[..., i],
                                       axis=-1, keepdims=True))
    return path, jnp.concatenate(parts, axis=-1)


if __name__ == "__main__":
    B, input_dim, order, N, d = 2, 32, 2, 8, 3   # order fixed to 2 (see TODO above)
    key = jax.random.PRNGKey(0)
    kx, kp = jax.random.split(key)
    x = jax.random.normal(kx, (B, input_dim), jnp.float32)
    params = init_params(kp, input_dim, N, d)

    path, sig = net_time_forward(x, params, N=N, d=d)
    jax.block_until_ready((path, sig))

    assert path.shape == (B, N + 1, d + 1)
    assert sig.shape == (B, (d + 1) + (d + 1) * d // 2)

    path_ref, sig_ref = _reference_forward(x, params, N=N, d=d)
    perr = float(jnp.max(jnp.abs(path - path_ref)))
    serr = float(jnp.max(jnp.abs(sig - sig_ref)))
    # bf16 MXU inputs with f32 accumulation: slightly looser atol than pure f32.
    assert bool(jnp.allclose(path, path_ref, rtol=5e-2, atol=2e-2)), f"path err {perr}"
    assert bool(jnp.allclose(sig, sig_ref, rtol=5e-2, atol=2e-2)), f"sig err {serr}"

    print("KERNEL_OK")
</pallas_src>

<mosaic_0001>
module attributes {stable_mosaic.version = 11 : i64} {
  func.func @_net_time_kernel(%arg0: i32, %arg1: memref<8x32xf32, #tpu.memory_space<vmem>>, %arg2: memref<32x256xbf16, #tpu.memory_space<vmem>>, %arg3: memref<1x256xf32, #tpu.memory_space<vmem>>, %arg4: memref<256x256xbf16, #tpu.memory_space<vmem>>, %arg5: memref<1x256xf32, #tpu.memory_space<vmem>>, %arg6: memref<256x128xbf16, #tpu.memory_space<vmem>>, %arg7: memref<1x128xf32, #tpu.memory_space<vmem>>, %arg8: memref<128x1152xbf16, #tpu.memory_space<vmem>>, %arg9: memref<1x1152xf32, #tpu.memory_space<vmem>>, %arg10: memref<8x128xf32, #tpu.memory_space<vmem>>) attributes {dimension_semantics = [#tpu.dimension_semantics<parallel>], iteration_bounds = array<i64: 1>, scalar_prefetch = 0 : i64, scratch_operands = 0 : i64, tpu.core_type = #tpu.core_type<tc>, window_params = [{transform_indices = @transform_0, window_bounds = array<i64: 8, 32>}, {pipeline_mode = #tpu.pipeline_mode<synchronous>, transform_indices = @transform_1, window_bounds = array<i64: 32, 256>}, {pipeline_mode = #tpu.pipeline_mode<synchronous>, transform_indices = @transform_2, window_bounds = array<i64: 1, 256>}, {pipeline_mode = #tpu.pipeline_mode<synchronous>, transform_indices = @transform_3, window_bounds = array<i64: 256, 256>}, {pipeline_mode = #tpu.pipeline_mode<synchronous>, transform_indices = @transform_4, window_bounds = array<i64: 1, 256>}, {pipeline_mode = #tpu.pipeline_mode<synchronous>, transform_indices = @transform_5, window_bounds = array<i64: 256, 128>}, {pipeline_mode = #tpu.pipeline_mode<synchronous>, transform_indices = @transform_6, window_bounds = array<i64: 1, 128>}, {pipeline_mode = #tpu.pipeline_mode<synchronous>, transform_indices = @transform_7, window_bounds = array<i64: 128, 1152>}, {pipeline_mode = #tpu.pipeline_mode<synchronous>, transform_indices = @transform_8, window_bounds = array<i64: 1, 1152>}, {transform_indices = @transform_9, window_bounds = array<i64: 8, 128>}]} {
    %c0 = arith.constant 0 : index
    %c0_0 = arith.constant 0 : index
    %0 = vector.load %arg1[%c0, %c0_0] : memref<8x32xf32, #tpu.memory_space<vmem>>, vector<8x32xf32>
    %1 = arith.truncf %0 : vector<8x32xf32> to vector<8x32xbf16>
    %c0_1 = arith.constant 0 : index
    %c0_2 = arith.constant 0 : index
    %2 = vector.load %arg2[%c0_1, %c0_2] : memref<32x256xbf16, #tpu.memory_space<vmem>>, vector<32x256xbf16>
    %cst = arith.constant dense<0.000000e+00> : vector<8x256xf32>
    %3 = tpu.matmul %1, %2, %cst {dimension_numbers = #tpu.dot_dimension_numbers<[1], [0], [0], [1], [0, 0, 1, 1], [], []>} : vector<8x32xbf16>, vector<32x256xbf16>, vector<8x256xf32> -> vector<8x256xf32>
    %c0_3 = arith.constant 0 : index
    %c0_4 = arith.constant 0 : index
    %4 = vector.load %arg3[%c0_3, %c0_4] : memref<1x256xf32, #tpu.memory_space<vmem>>, vector<1x256xf32>
    %5 = vector.broadcast %4 : vector<1x256xf32> to vector<8x256xf32>
    %6 = arith.addf %3, %5 : vector<8x256xf32>
    %cst_5 = arith.constant 0.000000e+00 : f32
    %7 = vector.broadcast %cst_5 : f32 to vector<8x256xf32>
    %8 = arith.maximumf %6, %7 : vector<8x256xf32>
    %9 = arith.truncf %8 : vector<8x256xf32> to vector<8x256xbf16>
    %c0_6 = arith.constant 0 : index
    %c0_7 = arith.constant 0 : index
    %10 = vector.load %arg4[%c0_6, %c0_7] : memref<256x256xbf16, #tpu.memory_space<vmem>>, vector<256x256xbf16>
    %cst_8 = arith.constant dense<0.000000e+00> : vector<8x256xf32>
    %11 = tpu.matmul %9, %10, %cst_8 {dimension_numbers = #tpu.dot_dimension_numbers<[1], [0], [0], [1], [0, 0, 1, 1], [], []>} : vector<8x256xbf16>, vector<256x256xbf16>, vector<8x256xf32> -> vector<8x256xf32>
    %c0_9 = arith.constant 0 : index
    %c0_10 = arith.constant 0 : index
    %12 = vector.load %arg5[%c0_9, %c0_10] : memref<1x256xf32, #tpu.memory_space<vmem>>, vector<1x256xf32>
    %13 = vector.broadcast %12 : vector<1x256xf32> to vector<8x256xf32>
    %14 = arith.addf %11, %13 : vector<8x256xf32>
    %cst_11 = arith.constant 0.000000e+00 : f32
    %15 = vector.broadcast %cst_11 : f32 to vector<8x256xf32>
    %16 = arith.maximumf %14, %15 : vector<8x256xf32>
    %17 = arith.truncf %16 : vector<8x256xf32> to vector<8x256xbf16>
    %c0_12 = arith.constant 0 : index
    %c0_13 = arith.constant 0 : index
    %18 = vector.load %arg6[%c0_12, %c0_13] : memref<256x128xbf16, #tpu.memory_space<vmem>>, vector<256x128xbf16>
    %cst_14 = arith.constant dense<0.000000e+00> : vector<8x128xf32>
    %19 = tpu.matmul %17, %18, %cst_14 {dimension_numbers = #tpu.dot_dimension_numbers<[1], [0], [0], [1], [0, 0, 1, 1], [], []>} : vector<8x256xbf16>, vector<256x128xbf16>, vector<8x128xf32> -> vector<8x128xf32>
    %c0_15 = arith.constant 0 : index
    %c0_16 = arith.constant 0 : index
    %20 = vector.load %arg7[%c0_15, %c0_16] : memref<1x128xf32, #tpu.memory_space<vmem>>, vector<1x128xf32>
    %21 = vector.broadcast %20 : vector<1x128xf32> to vector<8x128xf32>
    %22 = arith.addf %19, %21 : vector<8x128xf32>
    %cst_17 = arith.constant 0.000000e+00 : f32
    %23 = vector.broadcast %cst_17 : f32 to vector<8x128xf32>
    %24 = arith.maximumf %22, %23 : vector<8x128xf32>
    %25 = arith.truncf %24 : vector<8x128xf32> to vector<8x128xbf16>
    %c0_18 = arith.constant 0 : index
    %c0_19 = arith.constant 0 : index
    %26 = vector.load %arg8[%c0_18, %c0_19] : memref<128x1152xbf16, #tpu.memory_space<vmem>>, vector<128x1152xbf16>
    %cst_20 = arith.constant dense<0.000000e+00> : vector<8x1152xf32>
    %27 = tpu.matmul %25, %26, %cst_20 {dimension_numbers = #tpu.dot_dimension_numbers<[1], [0], [0], [1], [0, 0, 1, 1], [], []>} : vector<8x128xbf16>, vector<128x1152xbf16>, vector<8x1152xf32> -> vector<8x1152xf32>
    %c0_21 = arith.constant 0 : index
    %c0_22 = arith.constant 0 : index
    %28 = vector.load %arg9[%c0_21, %c0_22] : memref<1x1152xf32, #tpu.memory_space<vmem>>, vector<1x1152xf32>
    %29 = vector.broadcast %28 : vector<1x1152xf32> to vector<8x1152xf32>
    %30 = arith.addf %27, %29 : vector<8x1152xf32>
    %31 = vector.extract_strided_slice %30 {offsets = [0, 0], sizes = [8, 128], strides = [1, 1]} : vector<8x1152xf32> to vector<8x128xf32>
    %32 = vector.extract_strided_slice %30 {offsets = [0, 128], sizes = [8, 512], strides = [1, 1]} : vector<8x1152xf32> to vector<8x512xf32>
    %33 = vector.extract_strided_slice %30 {offsets = [0, 640], sizes = [8, 512], strides = [1, 1]} : vector<8x1152xf32> to vector<8x512xf32>
    %34 = tpu.iota {dimensions = array<i32: 1>} : vector<8x128xi32>
    %35 = vector.extract_strided_slice %32 {offsets = [0, 0], sizes = [8, 128], strides = [1, 1]} : vector<8x512xf32> to vector<8x128xf32>
    %36 = vector.extract_strided_slice %33 {offsets = [0, 0], sizes = [8, 128], strides = [1, 1]} : vector<8x512xf32> to vector<8x128xf32>
    %37 = vector.extract_strided_slice %32 {offsets = [0, 128], sizes = [8, 128], strides = [1, 1]} : vector<8x512xf32> to vector<8x128xf32>
    %38 = vector.extract_strided_slice %33 {offsets = [0, 128], sizes = [8, 128], strides = [1, 1]} : vector<8x512xf32> to vector<8x128xf32>
    %39 = arith.mulf %35, %38 : vector<8x128xf32>
    %40 = arith.mulf %37, %36 : vector<8x128xf32>
    %41 = arith.subf %39, %40 : vector<8x128xf32>
    %cst_23 = arith.constant dense<0.000000e+00> : vector<8xf32>
    %42 = vector.multi_reduction <add>, %41, %cst_23 [1] : vector<8x128xf32> to vector<8xf32>
    %43 = vector.shape_cast %42 : vector<8xf32> to vector<8x1xf32>
    %c40_i32 = arith.constant 40 : i32
    %44 = vector.broadcast %c40_i32 : i32 to vector<8x128xi32>
    %45 = arith.cmpi eq, %34, %44 : vector<8x128xi32>
    %46 = vector.shape_cast %43 : vector<8x1xf32> to vector<8x1xf32>
    %47 = vector.broadcast %46 : vector<8x1xf32> to vector<8x128xf32>
    %48 = arith.select %45, %47, %31 : vector<8x128xi1>, vector<8x128xf32>
    %49 = vector.extract_strided_slice %32 {offsets = [0, 256], sizes = [8, 128], strides = [1, 1]} : vector<8x512xf32> to vector<8x128xf32>
    %50 = vector.extract_strided_slice %33 {offsets = [0, 256], sizes = [8, 128], strides = [1, 1]} : vector<8x512xf32> to vector<8x128xf32>
    %51 = arith.mulf %35, %50 : vector<8x128xf32>
    %52 = arith.mulf %49, %36 : vector<8x128xf32>
    %53 = arith.subf %51, %52 : vector<8x128xf32>
    %cst_24 = arith.constant dense<0.000000e+00> : vector<8xf32>
    %54 = vector.multi_reduction <add>, %53, %cst_24 [1] : vector<8x128xf32> to vector<8xf32>
    %55 = vector.shape_cast %54 : vector<8xf32> to vector<8x1xf32>
    %c41_i32 = arith.constant 41 : i32
    %56 = vector.broadcast %c41_i32 : i32 to vector<8x128xi32>
    %57 = arith.cmpi eq, %34, %56 : vector<8x128xi32>
    %58 = vector.shape_cast %55 : vector<8x1xf32> to vector<8x1xf32>
    %59 = vector.broadcast %58 : vector<8x1xf32> to vector<8x128xf32>
    %60 = arith.select %57, %59, %48 : vector<8x128xi1>, vector<8x128xf32>
    %61 = vector.extract_strided_slice %32 {offsets = [0, 384], sizes = [8, 128], strides = [1, 1]} : vector<8x512xf32> to vector<8x128xf32>
    %62 = vector.extract_strided_slice %33 {offsets = [0, 384], sizes = [8, 128], strides = [1, 1]} : vector<8x512xf32> to vector<8x128xf32>
    %63 = arith.mulf %35, %62 : vector<8x128xf32>
    %64 = arith.mulf %61, %36 : vector<8x128xf32>
    %65 = arith.subf %63, %64 : vector<8x128xf32>
    %cst_25 = arith.constant dense<0.000000e+00> : vector<8xf32>
    %66 = vector.multi_reduction <add>, %65, %cst_25 [1] : vector<8x128xf32> to vector<8xf32>
    %67 = vector.shape_cast %66 : vector<8xf32> to vector<8x1xf32>
    %c42_i32 = arith.constant 42 : i32
    %68 = vector.broadcast %c42_i32 : i32 to vector<8x128xi32>
    %69 = arith.cmpi eq, %34, %68 : vector<8x128xi32>
    %70 = vector.shape_cast %67 : vector<8x1xf32> to vector<8x1xf32>
    %71 = vector.broadcast %70 : vector<8x1xf32> to vector<8x128xf32>
    %72 = arith.select %69, %71, %60 : vector<8x128xi1>, vector<8x128xf32>
    %73 = vector.extract_strided_slice %32 {offsets = [0, 128], sizes = [8, 128], strides = [1, 1]} : vector<8x512xf32> to vector<8x128xf32>
    %74 = vector.extract_strided_slice %33 {offsets = [0, 128], sizes = [8, 128], strides = [1, 1]} : vector<8x512xf32> to vector<8x128xf32>
    %75 = vector.extract_strided_slice %32 {offsets = [0, 256], sizes = [8, 128], strides = [1, 1]} : vector<8x512xf32> to vector<8x128xf32>
    %76 = vector.extract_strided_slice %33 {offsets = [0, 256], sizes = [8, 128], strides = [1, 1]} : vector<8x512xf32> to vector<8x128xf32>
    %77 = arith.mulf %73, %76 : vector<8x128xf32>
    %78 = arith.mulf %75, %74 : vector<8x128xf32>
    %79 = arith.subf %77, %78 : vector<8x128xf32>
    %cst_26 = arith.constant dense<0.000000e+00> : vector<8xf32>
    %80 = vector.multi_reduction <add>, %79, %cst_26 [1] : vector<8x128xf32> to vector<8xf32>
    %81 = vector.shape_cast %80 : vector<8xf32> to vector<8x1xf32>
    %c43_i32 = arith.constant 43 : i32
    %82 = vector.broadcast %c43_i32 : i32 to vector<8x128xi32>
    %83 = arith.cmpi eq, %34, %82 : vector<8x128xi32>
    %84 = vector.shape_cast %81 : vector<8x1xf32> to vector<8x1xf32>
    %85 = vector.broadcast %84 : vector<8x1xf32> to vector<8x128xf32>
    %86 = arith.select %83, %85, %72 : vector<8x128xi1>, vector<8x128xf32>
    %87 = vector.extract_strided_slice %32 {offsets = [0, 384], sizes = [8, 128], strides = [1, 1]} : vector<8x512xf32> to vector<8x128xf32>
    %88 = vector.extract_strided_slice %33 {offsets = [0, 384], sizes = [8, 128], strides = [1, 1]} : vector<8x512xf32> to vector<8x128xf32>
    %89 = arith.mulf %73, %88 : vector<8x128xf32>
    %90 = arith.mulf %87, %74 : vector<8x128xf32>
    %91 = arith.subf %89, %90 : vector<8x128xf32>
    %cst_27 = arith.constant dense<0.000000e+00> : vector<8xf32>
    %92 = vector.multi_reduction <add>, %91, %cst_27 [1] : vector<8x128xf32> to vector<8xf32>
    %93 = vector.shape_cast %92 : vector<8xf32> to vector<8x1xf32>
    %c44_i32 = arith.constant 44 : i32
    %94 = vector.broadcast %c44_i32 : i32 to vector<8x128xi32>
    %95 = arith.cmpi eq, %34, %94 : vector<8x128xi32>
    %96 = vector.shape_cast %93 : vector<8x1xf32> to vector<8x1xf32>
    %97 = vector.broadcast %96 : vector<8x1xf32> to vector<8x128xf32>
    %98 = arith.select %95, %97, %86 : vector<8x128xi1>, vector<8x128xf32>
    %99 = vector.extract_strided_slice %32 {offsets = [0, 256], sizes = [8, 128], strides = [1, 1]} : vector<8x512xf32> to vector<8x128xf32>
    %100 = vector.extract_strided_slice %33 {offsets = [0, 256], sizes = [8, 128], strides = [1, 1]} : vector<8x512xf32> to vector<8x128xf32>
    %101 = vector.extract_strided_slice %32 {offsets = [0, 384], sizes = [8, 128], strides = [1, 1]} : vector<8x512xf32> to vector<8x128xf32>
    %102 = vector.extract_strided_slice %33 {offsets = [0, 384], sizes = [8, 128], strides = [1, 1]} : vector<8x512xf32> to vector<8x128xf32>
    %103 = arith.mulf %99, %102 : vector<8x128xf32>
    %104 = arith.mulf %101, %100 : vector<8x128xf32>
    %105 = arith.subf %103, %104 : vector<8x128xf32>
    %cst_28 = arith.constant dense<0.000000e+00> : vector<8xf32>
    %106 = vector.multi_reduction <add>, %105, %cst_28 [1] : vector<8x128xf32> to vector<8xf32>
    %107 = vector.shape_cast %106 : vector<8xf32> to vector<8x1xf32>
    %c45_i32 = arith.constant 45 : i32
    %108 = vector.broadcast %c45_i32 : i32 to vector<8x128xi32>
    %109 = arith.cmpi eq, %34, %108 : vector<8x128xi32>
    %110 = vector.shape_cast %107 : vector<8x1xf32> to vector<8x1xf32>
    %111 = vector.broadcast %110 : vector<8x1xf32> to vector<8x128xf32>
    %112 = arith.select %109, %111, %98 : vector<8x128xi1>, vector<8x128xf32>
    %c0_29 = arith.constant 0 : index
    %c0_30 = arith.constant 0 : index
    %113 = vector.load %arg10[%c0_29, %c0_30] : memref<8x128xf32, #tpu.memory_space<vmem>>, vector<8x128xf32>
    tpu.vector_store %arg10[%c0_29, %c0_30], %112 {strides = array<i32>} : memref<8x128xf32, #tpu.memory_space<vmem>>, vector<8x128xf32>,
    return
  }
  func.func @transform_0(%arg0: i32) -> (i32, i32) {
    %c0_i32 = arith.constant 0 : i32
    %c0_i32_0 = arith.constant 0 : i32
    return %arg0, %c0_i32 : i32, i32
  }
  func.func @transform_1(%arg0: i32) -> (i32, i32) {
    %c0_i32 = arith.constant 0 : i32
    %c0_i32_0 = arith.constant 0 : i32
    %c0_i32_1 = arith.constant 0 : i32
    return %c0_i32, %c0_i32_0 : i32, i32
  }
  func.func @transform_2(%arg0: i32) -> (i32, i32) {
    %c0_i32 = arith.constant 0 : i32
    %c0_i32_0 = arith.constant 0 : i32
    %c0_i32_1 = arith.constant 0 : i32
    return %c0_i32, %c0_i32_0 : i32, i32
  }
  func.func @transform_3(%arg0: i32) -> (i32, i32) {
    %c0_i32 = arith.constant 0 : i32
    %c0_i32_0 = arith.constant 0 : i32
    %c0_i32_1 = arith.constant 0 : i32
    return %c0_i32, %c0_i32_0 : i32, i32
  }
  func.func @transform_4(%arg0: i32) -> (i32, i32) {
    %c0_i32 = arith.constant 0 : i32
    %c0_i32_0 = arith.constant 0 : i32
    %c0_i32_1 = arith.constant 0 : i32
    return %c0_i32, %c0_i32_0 : i32, i32
  }
  func.func @transform_5(%arg0: i32) -> (i32, i32) {
    %c0_i32 = arith.constant 0 : i32
    %c0_i32_0 = arith.constant 0 : i32
    %c0_i32_1 = arith.constant 0 : i32
    return %c0_i32, %c0_i32_0 : i32, i32
  }
  func.func @transform_6(%arg0: i32) -> (i32, i32) {
    %c0_i32 = arith.constant 0 : i32
    %c0_i32_0 = arith.constant 0 : i32
    %c0_i32_1 = arith.constant 0 : i32
    return %c0_i32, %c0_i32_0 : i32, i32
  }
  func.func @transform_7(%arg0: i32) -> (i32, i32) {
    %c0_i32 = arith.constant 0 : i32
    %c0_i32_0 = arith.constant 0 : i32
    %c0_i32_1 = arith.constant 0 : i32
    return %c0_i32, %c0_i32_0 : i32, i32
  }
  func.func @transform_8(%arg0: i32) -> (i32, i32) {
    %c0_i32 = arith.constant 0 : i32
    %c0_i32_0 = arith.constant 0 : i32
    %c0_i32_1 = arith.constant 0 : i32
    return %c0_i32, %c0_i32_0 : i32, i32
  }
  func.func @transform_9(%arg0: i32) -> (i32, i32) {
    %c0_i32 = arith.constant 0 : i32
    %c0_i32_0 = arith.constant 0 : i32
    return %arg0, %c0_i32 : i32, i32
  }
}

</mosaic_0001>

<bundles_post_ra>
// kernel: tpu_custom_call.1
= control target key start
LH: loop header
LB: loop body
LE: loop exit
PB: predicated region body
PF: predicated region fallthrough
CT: control target
= control target key end

     0   :  { %14 = vsyncpa [#allocation3], 0  ;;  %s2085_s0 = inlined_call_operand.hbm [shape: f32[8,32], index: 0, kind: input, shape index: {}]   ;;  %s2086_s1 = inlined_call_operand.hbm [shape: bf16[32,256], index: 1, kind: input, shape index: {}]   ;;  %s2087_s2 = inlined_call_operand.vmem [shape: f32[1,256], index: 2, kind: input, shape index: {}]   ;;  %s2088_s3 = inlined_call_operand.hbm [shape: bf16[256,256], index: 3, kind: input, shape index: {}]   ;;  %s2089_s4 = inlined_call_operand.vmem [shape: f32[1,256], index: 4, kind: input, shape index: {}]   ;;  %s2090_s5 = inlined_call_operand.hbm [shape: bf16[256,128], index: 5, kind: input, shape index: {}]   ;;  %s2091_s6 = inlined_call_operand.vmem [shape: f32[1,128], index: 6, kind: input, shape index: {}]   ;;  %s2092_s7 = inlined_call_operand.hbm [shape: bf16[128,1152], index: 7, kind: input, shape index: {}]   ;;  %s2093_s8 = inlined_call_operand.vmem [shape: f32[1,1152], index: 8, kind: input, shape index: {}]   ;;  %s2094_s9 = inlined_call_operand.hbm [shape: f32[8,128], index: 9, kind: output, shape index: {}]  }
   0x1   :  { %15 = vsyncpa [#allocation6], 0 }
   0x2   :  { %16 = vsyncpa [#allocation9], 0 }
   0x3   :  { %17 = vsyncpa [#allocation4], 0  ;;  %s1883_s30 = smov [#allocation5]   ;;  %s1743_s13 = scalar_lea.hbm %s2086_s1, 512 }
   0x4   :  { %s33_s10 = sshll.u32 %s1883_s30, 4  ;;  %p1744_p0 = scmp.ne.s32.totalorder %s2086_s1, %s1743_s13  ;;  %s34_s10 = int_to_ptr.vmem [resolvable:$true] %s33_s10 }
   0x5   :  { %p1747_p1 = scmp.lt.u32.totalorder %s1743_s13, %s2086_s1 }
   0x7   :  { %p1749_p2 = pnand %p1747_p1, %p1744_p0 }
   0x9   :  { %1752 = shalt.err (!%p1749_p2)
}
   0xa   :  { %s1753_s18 = scalar_lea.vmem %s34_s10, 512  ;;  %p1758_p4 = scmp.lt.s32.totalorder %s34_s10, %s34_s10 }
   0xb   :  { %p1754_p3 = scmp.ne.s32.totalorder %s34_s10, %s1753_s18  ;;  %p1759_p5 = scmp.lt.s32.totalorder %s1753_s18, %s1753_s18 }
   0xd   :  { %p1760_p6 = por %p1759_p5, %p1758_p4 }
   0xf   :  { %p1761_p7 = pnand %p1760_p6, %p1754_p3 }
  0x11   :  { %1764 = shalt.err (!%p1761_p7)
}
  0x12   :  { %s1884_s19 = smov 128   ;;  %s1885_s20 = smov 8  }
  0x13   :  { %39 = dma.hbm_to_vmem [thread:$0]  %s2086_s1, 512, %s34_s10, [#allocation6], %s1884_s19, %s1884_s19, %s1885_s20  }
  0x14   :  { %s1886_s23 = smov [#allocation8]   ;;  %s1765_s27 = scalar_lea.hbm %s2090_s5, 2048 }
  0x15   :  { %s61_s24 = sshll.u32 %s1886_s23, 4  ;;  %p1766_p8 = scmp.ne.s32.totalorder %s2090_s5, %s1765_s27  ;;  %s62_s24 = int_to_ptr.vmem [resolvable:$true] %s61_s24 }
  0x16   :  { %p1769_p9 = scmp.lt.u32.totalorder %s1765_s27, %s2090_s5 }
  0x18   :  { %p1771_p10 = pnand %p1769_p9, %p1766_p8 }
  0x1a   :  { %1774 = shalt.err (!%p1771_p10)
}
  0x1b   :  { %s1775_s12 = scalar_lea.vmem %s62_s24, 2048  ;;  %p1780_p12 = scmp.lt.s32.totalorder %s62_s24, %s62_s24 }
  0x1c   :  { %p1776_p11 = scmp.ne.s32.totalorder %s62_s24, %s1775_s12  ;;  %p1781_p13 = scmp.lt.s32.totalorder %s1775_s12, %s1775_s12 }
  0x1e   :  { %p1782_p0 = por %p1781_p13, %p1780_p12 }
  0x20   :  { %p1783_p1 = pnand %p1782_p0, %p1776_p11 }
  0x22   :  { %1786 = shalt.err (!%p1783_p1)
}
  0x23   :  { %s1887_s1 = smov 64   ;;  %s1888_s10 = smov 4  }
  0x24   :  { %67 = dma.hbm_to_vmem [thread:$0]  %s2090_s5, 2048, %s62_s24, [#allocation9], %s1887_s1, %s1887_s1, %s1888_s10  }
  0x25   :  { %s1889_s15 = smov [#allocation2]   ;;  %s1890_s17 = smov [#allocation7]  }
  0x26   :  { %s24_s16 = sshll.u32 %s1889_s15, 4  ;;  %s47_s18 = sshll.u32 %s1890_s17, 4  ;;  %s25_s16 = int_to_ptr.vmem [resolvable:$true] %s24_s16  ;;  %s1975_s18 = int_to_ptr.vmem [resolvable:$true] %s47_s18 }
  0x27   :  { %s1787_s23 = scalar_lea.hbm %s2085_s0, 128 }
  0x28   :  { %p1788_p2 = scmp.ne.s32.totalorder %s2085_s0, %s1787_s23  ;;  %p1791_p3 = scmp.lt.u32.totalorder %s1787_s23, %s2085_s0 }
  0x2a   :  { %p1793_p4 = pnand %p1791_p3, %p1788_p2 }
  0x2c   :  { %1796 = shalt.err (!%p1793_p4)
}
  0x2d   :  { %s1797_s5 = scalar_lea.vmem %s25_s16, 128  ;;  %p1802_p6 = scmp.lt.s32.totalorder %s25_s16, %s25_s16 }
  0x2e   :  { %p1798_p5 = scmp.ne.s32.totalorder %s25_s16, %s1797_s5  ;;  %p1803_p7 = scmp.lt.s32.totalorder %s1797_s5, %s1797_s5 }
  0x30   :  { %p1804_p8 = por %p1803_p7, %p1802_p6 }
  0x32   :  { %p1805_p9 = pnand %p1804_p8, %p1798_p5 }
  0x34   :  { %1808 = shalt.err (!%p1805_p9)
}
  0x35   :  { %27 = dma.hbm_to_vmem [thread:$0]  %s2085_s0, 128, %s25_s16, [#allocation3]  }
  0x36   :  { %s1809_s12 = scalar_lea.hbm %s2088_s3, 4096 }
  0x37   :  { %p1810_p10 = scmp.ne.s32.totalorder %s2088_s3, %s1809_s12  ;;  %p1813_p11 = scmp.lt.u32.totalorder %s1809_s12, %s2088_s3 }
  0x39   :  { %p1815_p12 = pnand %p1813_p11, %p1810_p10 }
  0x3b   :  { %1818 = shalt.err (!%p1815_p12)
}
  0x3c   :  { %s1819_s15 = scalar_lea.vmem %s1975_s18, 4096  ;;  %p1824_p0 = scmp.lt.s32.totalorder %s1975_s18, %s1975_s18 }
  0x3d   :  { %p1820_p13 = scmp.ne.s32.totalorder %s1975_s18, %s1819_s15  ;;  %p1825_p1 = scmp.lt.s32.totalorder %s1819_s15, %s1819_s15 }
  0x3f   :  { %p1826_p2 = por %p1825_p1, %p1824_p0 }
  0x41   :  { %p1827_p3 = pnand %p1826_p2, %p1820_p13 }
  0x43   :  { %1830 = shalt.err (!%p1827_p3)
}
  0x44   :  { %53 = dma.hbm_to_vmem [thread:$0]  %s2088_s3, 4096, %s1975_s18, [#allocation6], %s1884_s19, %s1884_s19, %s1885_s20  }
  0x45   :  { %s1891_s17 = smov [#allocation10]   ;;  %s1831_s25 = scalar_lea.hbm %s2092_s7, 9216 }
  0x46   :  { %s75_s21 = sshll.u32 %s1891_s17, 4  ;;  %p1832_p4 = scmp.ne.s32.totalorder %s2092_s7, %s1831_s25  ;;  %s76_s21 = int_to_ptr.vmem [resolvable:$true] %s75_s21 }
  0x47   :  { %p1835_p5 = scmp.lt.u32.totalorder %s1831_s25, %s2092_s7 }
  0x49   :  { %p1837_p6 = pnand %p1835_p5, %p1832_p4 }
  0x4b   :  { %1840 = shalt.err (!%p1837_p6)
}
  0x4c   :  { %s1841_s24 = scalar_lea.vmem %s76_s21, 9216  ;;  %p1846_p8 = scmp.lt.s32.totalorder %s76_s21, %s76_s21 }
  0x4d   :  { %p1842_p7 = scmp.ne.s32.totalorder %s76_s21, %s1841_s24  ;;  %p1847_p9 = scmp.lt.s32.totalorder %s1841_s24, %s1841_s24 }
  0x4f   :  { %p1848_p10 = por %p1847_p9, %p1846_p8 }
  0x51   :  { %p1849_p11 = pnand %p1848_p10, %p1842_p7 }
  0x53   :  { %1852 = shalt.err (!%p1849_p11)
}
  0x54   :  { %s1892_s3 = smov 576   ;;  %s1893_s19 = smov 36  }
  0x55   :  { %81 = dma.hbm_to_vmem [thread:$0]  %s2092_s7, 9216, %s76_s21, [#allocation9], %s1892_s3, %s1892_s3, %s1893_s19  }
  0x56   :  { %1875 = dma.done.wait [#allocation3], 128  }
  0x57   :  { %1876 = vsyncadd [#allocation3], 4294967168 }
  0x58   :  { %1877 = dma.done.wait [#allocation6], 4608  }
  0x59   :  { %1878 = vsyncadd [#allocation6], 4294962688 }
  0x5a   :  { %1879 = dma.done.wait [#allocation9], 11264  }
  0x5b   :  { %1880 = vsyncadd [#allocation9], 4294956032  ;;  %v1894_v0 = vmov 0   ;;  %v1569_v1 = vld [vmem:[#allocation5 + $0x4] ss:$8 sps:$4 sm:$0xff]   ;;  %v100_v5 = vld [vmem:[#allocation2] sm:$0xff]  ;;  %v108_v51 = vlaneseq }
  0x5c   :  { %174 = vmatprep.mubr.bf16.mxu0 %v1894_v0  ;;  %v1571_v2 = vld [vmem:[#allocation5] ss:$8 sps:$4 sm:$0xff]   ;;  %142 = vmatprep.subr.bf16.mxu0 %v1569_v1  ;;  %v1572_v3 = vld [vmem:[#allocation5 + $0x14] ss:$8 sps:$4 sm:$0xff]   ;;  %v1574_v4 = vld [vmem:[#allocation5 + $0x10] ss:$8 sps:$4 sm:$0xff]   ;;  %v101_v9 = vpack.c.bf16 %v100_v5, %v100_v5 }
  0x5d   :  { %143 = vmatpush1.bf16.msra.mxu0 %v1571_v2  ;;  %v1575_v6 = vld [vmem:[#allocation7 + $0x4] ss:$8 sps:$4 sm:$0xff]   ;;  %v1577_v7 = vld [vmem:[#allocation7] ss:$8 sps:$4 sm:$0xff]   ;;  %v1578_v8 = vld [vmem:[#allocation7 + $0x14] ss:$8 sps:$4 sm:$0xff]  }
  0x5e   :  { %144 = vmatprep.subr.bf16.mxu0 %v1572_v3  ;;  %391 = vmatprep.subr.bf16.mxu1 %v1575_v6  ;;  %v1580_v10 = vld [vmem:[#allocation7 + $0x10] ss:$8 sps:$4 sm:$0xff]   ;;  %vm138_vm0 = vcmask 261120   ;;  %v1581_v11 = vld [vmem:[#allocation7 + $0x24] ss:$8 sps:$4 sm:$0xff]   ;;  %v2023_v52 = vshrl.u32 %v108_v51, 7 }
  0x5f   :  { %392 = vmatpush1.bf16.msra.mxu1 %v1577_v7  ;;  %v1583_v12 = vld [vmem:[#allocation7 + $0x20] ss:$8 sps:$4 sm:$0xff]   ;;  %v1584_v13 = vld [vmem:[#allocation7 + $0x34] ss:$8 sps:$4 sm:$0xff]   ;;  %v1586_v14 = vld [vmem:[#allocation7 + $0x30] ss:$8 sps:$4 sm:$0xff]  }
  0x60   :  { %393 = vmatprep.subr.bf16.mxu1 %v1578_v8  ;;  %v1587_v15 = vld [vmem:[#allocation7 + $0x44] ss:$8 sps:$4 sm:$0xff]   ;;  %v1589_v16 = vld [vmem:[#allocation7 + $0x40] ss:$8 sps:$4 sm:$0xff]   ;;  %v1590_v17 = vld [vmem:[#allocation7 + $0x54] ss:$8 sps:$4 sm:$0xff]  }
  0x61   :  { %145 = vmatpush1.bf16.msra.mxu0 %v1574_v4  ;;  %v1592_v18 = vld [vmem:[#allocation7 + $0x50] ss:$8 sps:$4 sm:$0xff]   ;;  %v1593_v19 = vld [vmem:[#allocation7 + $0x64] ss:$8 sps:$4 sm:$0xff]   ;;  %v1595_v20 = vld [vmem:[#allocation7 + $0x60] ss:$8 sps:$4 sm:$0xff]  }
  0x62   :  { %v1596_v21 = vld [vmem:[#allocation7 + $0x74] ss:$8 sps:$4 sm:$0xff]   ;;  %v1598_v22 = vld [vmem:[#allocation7 + $0x70] ss:$8 sps:$4 sm:$0xff]   ;;  %v1599_v23 = vld [vmem:[#allocation7 + $0x84] ss:$8 sps:$4 sm:$0xff]  }
  0x63   :  { %394 = vmatpush1.bf16.msra.mxu1 %v1580_v10  ;;  %v1601_v24 = vld [vmem:[#allocation7 + $0x80] ss:$8 sps:$4 sm:$0xff]   ;;  %v1602_v25 = vld [vmem:[#allocation7 + $0x94] ss:$8 sps:$4 sm:$0xff]   ;;  %v1604_v26 = vld [vmem:[#allocation7 + $0x90] ss:$8 sps:$4 sm:$0xff]  }
  0x64   :  { %1380 = vmatmul.mubr.msk.bf16.vlgmr.msra.gmra.mrb[0].mxu0 %vm138_vm0, %v101_v9  ;;  %395 = vmatprep.subr.bf16.mxu1 %v1581_v11  ;;  %v1605_v27 = vld [vmem:[#allocation7 + $0xa4] ss:$8 sps:$4 sm:$0xff]   ;;  %v1607_v28 = vld [vmem:[#allocation7 + $0xa0] ss:$8 sps:$4 sm:$0xff]   ;;  %v1608_v29 = vld [vmem:[#allocation7 + $0xb4] ss:$8 sps:$4 sm:$0xff]  }
  0x65   :  { %v1610_v30 = vld [vmem:[#allocation7 + $0xb0] ss:$8 sps:$4 sm:$0xff]   ;;  %v1611_v31 = vld [vmem:[#allocation7 + $0xc4] ss:$8 sps:$4 sm:$0xff]   ;;  %v1613_v32 = vld [vmem:[#allocation7 + $0xc0] ss:$8 sps:$4 sm:$0xff]  }
  0x66   :  { %v1614_v33 = vld [vmem:[#allocation7 + $0xd4] ss:$8 sps:$4 sm:$0xff]   ;;  %v1616_v34 = vld [vmem:[#allocation7 + $0xd0] ss:$8 sps:$4 sm:$0xff]   ;;  %v1617_v35 = vld [vmem:[#allocation7 + $0xe4] ss:$8 sps:$4 sm:$0xff]  }
  0x67   :  { %396 = vmatpush1.bf16.msra.mxu1 %v1583_v12  ;;  %v1619_v36 = vld [vmem:[#allocation7 + $0xe0] ss:$8 sps:$4 sm:$0xff]   ;;  %v1620_v37 = vld [vmem:[#allocation7 + $0xf4] ss:$8 sps:$4 sm:$0xff]   ;;  %v1622_v38 = vld [vmem:[#allocation7 + $0xf0] ss:$8 sps:$4 sm:$0xff]  }
  0x68   :  { %397 = vmatprep.subr.bf16.mxu1 %v1584_v13  ;;  %v1623_v39 = vld [vmem:[#allocation8 + $0x40] sm:$0xff]   ;;  %v1625_v41 = vld [vmem:[#allocation8 + $0x48] sm:$0xff]   ;;  %v1627_v43 = vld [vmem:[#allocation8 + $0x50] sm:$0xff]   ;;  %v2026_v53 = vsub.s32 0, %v2023_v52  ;;  %v2032_v55 = vsub.s32 1, %v2023_v52  ;;  %vm1896_vm1 = vmmov 0  }
  0x69   :  { %v1624_v40 = vld [vmem:[#allocation8] sm:$0xff]   ;;  %1503 = vmatprep.subr.bf16.mxu0 %v1623_v39  ;;  %v1626_v42 = vld [vmem:[#allocation8 + $0x8] sm:$0xff]   ;;  %v1628_v44 = vld [vmem:[#allocation8 + $0x10] sm:$0xff]  }
  0x6a   :  { %1504 = vmatpush3.bf16.msra.mxu0 %v1624_v40  ;;  %v1629_v45 = vld [vmem:[#allocation8 + $0x58] sm:$0xff]   ;;  %v1631_v47 = vld [vmem:[#allocation8 + $0x60] sm:$0xff]   ;;  %v1633_v49 = vld [vmem:[#allocation8 + $0x68] sm:$0xff]  }
  0x6b   :  { %398 = vmatpush1.bf16.msra.mxu1 %v1586_v14  ;;  %1505 = vmatprep.subr.bf16.mxu0 %v1625_v41  ;;  %v1630_v46 = vld [vmem:[#allocation8 + $0x18] sm:$0xff]   ;;  %v1632_v48 = vld [vmem:[#allocation8 + $0x20] sm:$0xff]   ;;  %v1634_v50 = vld [vmem:[#allocation8 + $0x28] sm:$0xff]  }
  0x6c   :  { %399 = vmatprep.subr.bf16.mxu1 %v1587_v15  ;;  %v106_v54 = vld [vmem:[%s2087_s2] sm:$0x3]  ;;  %v1635_v5 = vld [vmem:[#allocation8 + $0x70] sm:$0xff]   ;;  %v1637_v7 = vld [vmem:[#allocation8 + $0x78] sm:$0xff]  }
  0x6d   :  { %v111_v56 = vrot.slane %v106_v54, %v2026_v53  ;;  %v115_v57 = vrot.slane %v106_v54, %v2032_v55  ;;  %v1636_v6 = vld [vmem:[#allocation8 + $0x30] sm:$0xff]   ;;  %v1638_v8 = vld [vmem:[#allocation8 + $0x38] sm:$0xff]   ;;  %v1641_v9 = vld [vmem:[#allocation10 + $0x4] ss:$36 sps:$4 sm:$0xff]  }
  0x6e   :  { %1506 = vmatpush3.bf16.msra.mxu0 %v1626_v42  ;;  %v1642_v10 = vld [vmem:[#allocation10 + $0x8] ss:$36 sps:$4 sm:$0xff]   ;;  %v1650_v12 = vld [vmem:[#allocation10 + $0x54] ss:$36 sps:$4 sm:$0xff]   ;;  %v1656_v14 = vld [vmem:[#allocation10 + $0x9c] ss:$36 sps:$4 sm:$0xff]  }
  0x6f   :  { %400 = vmatpush1.bf16.msra.mxu1 %v1589_v16  ;;  %1507 = vmatprep.subr.bf16.mxu0 %v1627_v43  ;;  %v1644_v11 = vld [vmem:[#allocation10 + $0xc] ss:$36 sps:$4 sm:$0xff]   ;;  %v1654_v15 = vld [vmem:[#allocation10 + $0x98] ss:$36 sps:$4 sm:$0xff]   ;;  %v1662_v16 = vld [vmem:[#allocation10 + $0xe4] ss:$36 sps:$4 sm:$0xff]  }
  0x70   :  { %401 = vmatprep.subr.bf16.mxu1 %v1590_v17  ;;  %v1648_v13 = vld [vmem:[#allocation10 + $0x50] ss:$36 sps:$4 sm:$0xff]   ;;  %v1660_v17 = vld [vmem:[#allocation10 + $0xe0] ss:$36 sps:$4 sm:$0xff]   ;;  %v1657_v41 = vld [vmem:[#allocation10 + $0xd8] ss:$36 sps:$4 sm:$0xff]  }
  0x71   :  { %v1651_v39 = vld [vmem:[#allocation10 + $0x90] ss:$36 sps:$4 sm:$0xff]   ;;  %v1659_v40 = vld [vmem:[#allocation10 + $0xdc] ss:$36 sps:$4 sm:$0xff]   ;;  %v1665_v42 = vld [vmem:[#allocation10 + $0x124] ss:$36 sps:$4 sm:$0xff]  }
  0x72   :  { %1508 = vmatpush3.bf16.msra.mxu0 %v1628_v44  ;;  %v1663_v43 = vld [vmem:[#allocation10 + $0x120] ss:$36 sps:$4 sm:$0xff]   ;;  %v1671_v44 = vld [vmem:[#allocation10 + $0x16c] ss:$36 sps:$4 sm:$0xff]  }
  0x73   :  { %402 = vmatpush1.bf16.msra.mxu1 %v1592_v18  ;;  %1509 = vmatprep.subr.bf16.mxu0 %v1629_v45  ;;  %v1668_v18 = vld [vmem:[#allocation10 + $0x12c] ss:$36 sps:$4 sm:$0xff]   ;;  %v1686_v54 = vld [vmem:[#allocation10 + $0x204] ss:$36 sps:$4 sm:$0xff]  }
  0x74   :  { %403 = vmatprep.subr.bf16.mxu1 %v1593_v19  ;;  %v1666_v19 = vld [vmem:[#allocation10 + $0x128] ss:$36 sps:$4 sm:$0xff]  }
  0x75   :  { %v1669_v45 = vld [vmem:[#allocation10 + $0x168] ss:$36 sps:$4 sm:$0xff]  }
  0x76   :  { %1510 = vmatpush3.bf16.msra.mxu0 %v1630_v46  ;;  %v1677_v46 = vld [vmem:[#allocation10 + $0x1b4] ss:$36 sps:$4 sm:$0xff]  }
  0x77   :  { %404 = vmatpush1.bf16.msra.mxu1 %v1595_v20  ;;  %1511 = vmatprep.subr.bf16.mxu0 %v1631_v47  ;;  %v1674_v20 = vld [vmem:[#allocation10 + $0x174] ss:$36 sps:$4 sm:$0xff]   ;;  %v1680_v47 = vld [vmem:[#allocation10 + $0x1bc] ss:$36 sps:$4 sm:$0xff]  }
  0x78   :  { %405 = vmatprep.subr.bf16.mxu1 %v1596_v21  ;;  %v1672_v21 = vld [vmem:[#allocation10 + $0x170] ss:$36 sps:$4 sm:$0xff]  }
  0x7a   :  { %1512 = vmatpush3.bf16.msra.mxu0 %v1632_v48  ;;  %v1675_v48 = vld [vmem:[#allocation10 + $0x1b0] ss:$36 sps:$4 sm:$0xff]  }
  0x7b   :  { %406 = vmatpush1.bf16.msra.mxu1 %v1598_v22  ;;  %1513 = vmatprep.subr.bf16.mxu0 %v1633_v49  ;;  %v219_v22 = vld [vmem:[%s2089_s4] sm:$0x3]  ;;  %v1678_v49 = vld [vmem:[#allocation10 + $0x1b8] ss:$36 sps:$4 sm:$0xff]  }
  0x7c   :  { %407 = vmatprep.subr.bf16.mxu1 %v1599_v23  ;;  %v224_v23 = vrot.slane %v219_v22, %v2026_v53 }
  0x7e   :  { %1514 = vmatpush3.bf16.msra.mxu0 %v1634_v50  ;;  %v1683_v50 = vld [vmem:[#allocation10 + $0x1fc] ss:$36 sps:$4 sm:$0xff]  }
  0x7f   :  { %408 = vmatpush1.bf16.msra.mxu1 %v1601_v24  ;;  %1515 = vmatprep.subr.bf16.mxu0 %v1635_v5  ;;  %v228_v24 = vrot.slane %v219_v22, %v2032_v55  ;;  %v1687_v5 = vld [vmem:[#allocation10 + $0x10] ss:$36 sps:$4 sm:$0xff]  }
  0x80   :  { %409 = vmatprep.subr.bf16.mxu1 %v1602_v25  ;;  %v1711_v22 = vld [vmem:[#allocation10 + $0x130] ss:$36 sps:$4 sm:$0xff]  }
  0x82   :  { %1516 = vmatpush3.bf16.msra.mxu0 %v1636_v6  ;;  %v1690_v6 = vld [vmem:[#allocation10 + $0x18] ss:$36 sps:$4 sm:$0xff]  }
  0x83   :  { %410 = vmatpush1.bf16.msra.mxu1 %v1604_v26  ;;  %1517 = vmatprep.subr.bf16.mxu0 %v1637_v7 }
  0x84   :  { %411 = vmatprep.subr.bf16.mxu1 %v1605_v27 }
  0x86   :  { %1518 = vmatpush3.bf16.msra.mxu0 %v1638_v8  ;;  %v1695_v8 = vld [vmem:[#allocation10 + $0x5c] ss:$36 sps:$4 sm:$0xff]  }
  0x87   :  { %412 = vmatpush1.bf16.msra.mxu1 %v1607_v28  ;;  %1110 = vmatprep.subr.bf16.mxu0 %v1641_v9  ;;  %v1698_v9 = vld [vmem:[#allocation10 + $0x64] ss:$36 sps:$4 sm:$0xff]  }
  0x88   :  { %413 = vmatprep.subr.bf16.mxu1 %v1608_v29 }
  0x8b   :  { %414 = vmatpush1.bf16.msra.mxu1 %v1610_v30 }
  0x8c   :  { %415 = vmatprep.subr.bf16.mxu1 %v1611_v31 }
  0x8f   :  { %416 = vmatpush1.bf16.msra.mxu1 %v1613_v32 }
  0x90   :  { %417 = vmatprep.subr.bf16.mxu1 %v1614_v33 }
  0x93   :  { %418 = vmatpush1.bf16.msra.mxu1 %v1616_v34  ;;  %v1639_v34 = vld [vmem:[#allocation10] ss:$36 sps:$4 sm:$0xff]  }
  0x94   :  { %419 = vmatprep.subr.bf16.mxu1 %v1617_v35 }
  0x97   :  { %420 = vmatpush1.bf16.msra.mxu1 %v1619_v36  ;;  %v1647_v36 = vld [vmem:[#allocation10 + $0x4c] ss:$36 sps:$4 sm:$0xff]  }
  0x98   :  { %421 = vmatprep.subr.bf16.mxu1 %v1620_v37  ;;  %v1645_v37 = vld [vmem:[#allocation10 + $0x48] ss:$36 sps:$4 sm:$0xff]  }
  0x9b   :  { %422 = vmatpush1.bf16.msra.mxu1 %v1622_v38  ;;  %v1653_v38 = vld [vmem:[#allocation10 + $0x94] ss:$36 sps:$4 sm:$0xff]  }
  0x9c   :  { %1151 = vmatprep.subr.bf16.mxu1 %v1644_v11  ;;  %v1696_v11 = vld [vmem:[#allocation10 + $0x60] ss:$36 sps:$4 sm:$0xff]  }
 0x137   :  { %v176_v58 = vpop.f32.mrb[0].mxu0 }
 0x138   :  { %v177_v59 = vadd.f32 %v176_v58, %v111_v56  ;;  %v178_v60 = vpop.f32.mrb[1].mxu0  ;;  %v1681_v56 = vld [vmem:[#allocation10 + $0x1f8] ss:$36 sps:$4 sm:$0xff]  }
 0x139   :  { %v179_v61 = vadd.f32 %v178_v60, %v115_v57  ;;  %v180_v62 = vpop.f32.mrb[2].mxu0  ;;  %v1684_v57 = vld [vmem:[#allocation10 + $0x200] ss:$36 sps:$4 sm:$0xff]   ;;  %v1689_v58 = vld [vmem:[#allocation10 + $0x14] ss:$36 sps:$4 sm:$0xff]  }
 0x13a   :  { %v183_v63 = vmax.f32 %v177_v59, 0.0  ;;  %v181_v1 = vpop.f32.mrb[3].mxu0  ;;  %v1692_v59 = vld [vmem:[#allocation10 + $0x1c] ss:$36 sps:$4 sm:$0xff]  }
 0x13b   :  { %v184_v2 = vmax.f32 %v179_v61, 0.0  ;;  %v1413_v61 = vld [vmem:[%s2091_s6] ss:$0 sm:$0xff] }
 0x13c   :  { %v185_v4 = vpack.c.bf16 %v183_v63, %v183_v63 }
 0x13d   :  { %v186_v3 = vpack.c.bf16 %v184_v2, %v184_v2 }
 0x13f   :  { %423 = vmatprep.mubr.bf16.mxu1 %v186_v3 }
 0x140   :  { %424 = vmatmul.mubr.bf16.vlgmr.msra.gmra.mrb[0].mxu1 %v185_v4 }
 0x141   :  { %1183 = vmatprep.mubr.bf16.mxu1 %v1894_v0  ;;  %1152 = vmatpush1.bf16.msra.mxu1 %v1642_v10  ;;  %v1693_v10 = vld [vmem:[#allocation10 + $0x58] ss:$36 sps:$4 sm:$0xff]  }
 0x142   :  { %1153 = vmatprep.subr.bf16.mxu1 %v1650_v12  ;;  %v1701_v12 = vld [vmem:[#allocation10 + $0xa4] ss:$36 sps:$4 sm:$0xff]  }
 0x145   :  { %1154 = vmatpush1.bf16.msra.mxu1 %v1648_v13  ;;  %v1704_v13 = vld [vmem:[#allocation10 + $0xac] ss:$36 sps:$4 sm:$0xff]  }
 0x146   :  { %1155 = vmatprep.subr.bf16.mxu1 %v1656_v14  ;;  %v1699_v14 = vld [vmem:[#allocation10 + $0xa0] ss:$36 sps:$4 sm:$0xff]  }
 0x149   :  { %1156 = vmatpush1.bf16.msra.mxu1 %v1654_v15  ;;  %v1702_v15 = vld [vmem:[#allocation10 + $0xa8] ss:$36 sps:$4 sm:$0xff]  }
 0x14a   :  { %1157 = vmatprep.subr.bf16.mxu1 %v1662_v16  ;;  %v1707_v16 = vld [vmem:[#allocation10 + $0xec] ss:$36 sps:$4 sm:$0xff]  }
 0x14d   :  { %1158 = vmatpush1.bf16.msra.mxu1 %v1660_v17  ;;  %v1710_v17 = vld [vmem:[#allocation10 + $0xf4] ss:$36 sps:$4 sm:$0xff]  }
 0x14e   :  { %1159 = vmatprep.subr.bf16.mxu1 %v1668_v18  ;;  %v1705_v18 = vld [vmem:[#allocation10 + $0xe8] ss:$36 sps:$4 sm:$0xff]  }
 0x151   :  { %1160 = vmatpush1.bf16.msra.mxu1 %v1666_v19  ;;  %v1708_v19 = vld [vmem:[#allocation10 + $0xf0] ss:$36 sps:$4 sm:$0xff]  }
 0x152   :  { %1161 = vmatprep.subr.bf16.mxu1 %v1674_v20  ;;  %v1713_v20 = vld [vmem:[#allocation10 + $0x134] ss:$36 sps:$4 sm:$0xff]  }
 0x155   :  { %1162 = vmatpush1.bf16.msra.mxu1 %v1672_v21  ;;  %v1716_v21 = vld [vmem:[#allocation10 + $0x13c] ss:$36 sps:$4 sm:$0xff]  }
 0x156   :  { %1163 = vmatprep.subr.bf16.mxu1 %v1680_v47 }
 0x159   :  { %1164 = vmatpush1.bf16.msra.mxu1 %v1678_v49 }
 0x15a   :  { %1165 = vmatprep.subr.bf16.mxu1 %v1686_v54 }
 0x15d   :  { %1166 = vmatpush1.bf16.msra.mxu1 %v1684_v57  ;;  %v715_v57 = vsub.s32 4, %v2023_v52 }
 0x15e   :  { %1233 = vmatprep.subr.bf16.mxu1 %v1692_v59  ;;  %v693_v59 = vld [vmem:[%s2093_s8] sm:$0xff] }
 0x213   :  { %v425_v25 = vpop.f32.mrb[0].mxu1 }
 0x214   :  { %v426_v26 = vadd.f32 %v425_v25, %v224_v23  ;;  %v427_v27 = vpop.f32.mrb[1].mxu1  ;;  %v1719_v23 = vld [vmem:[#allocation10 + $0x17c] ss:$36 sps:$4 sm:$0xff]  }
 0x215   :  { %v428_v28 = vadd.f32 %v427_v27, %v228_v24  ;;  %v429_v29 = vpop.f32.mrb[2].mxu1  ;;  %v1722_v24 = vld [vmem:[#allocation10 + $0x184] ss:$36 sps:$4 sm:$0xff]   ;;  %v1717_v25 = vld [vmem:[#allocation10 + $0x178] ss:$36 sps:$4 sm:$0xff]  }
 0x216   :  { %v432_v30 = vmax.f32 %v426_v26, 0.0  ;;  %v430_v31 = vpop.f32.mrb[3].mxu1  ;;  %v1720_v26 = vld [vmem:[#allocation10 + $0x180] ss:$36 sps:$4 sm:$0xff]  }
 0x217   :  { %v433_v32 = vmax.f32 %v428_v28, 0.0  ;;  %v1725_v27 = vld [vmem:[#allocation10 + $0x1c4] ss:$36 sps:$4 sm:$0xff]   ;;  %v1728_v28 = vld [vmem:[#allocation10 + $0x1cc] ss:$36 sps:$4 sm:$0xff]  }
 0x218   :  { %v434_v35 = vpack.c.bf16 %v432_v30, %v432_v30  ;;  %v1723_v29 = vld [vmem:[#allocation10 + $0x1c0] ss:$36 sps:$4 sm:$0xff]   ;;  %v1726_v30 = vld [vmem:[#allocation10 + $0x1c8] ss:$36 sps:$4 sm:$0xff]  }
 0x219   :  { %v435_v33 = vpack.c.bf16 %v433_v32, %v433_v32  ;;  %v1731_v31 = vld [vmem:[#allocation10 + $0x20c] ss:$36 sps:$4 sm:$0xff]   ;;  %v1734_v32 = vld [vmem:[#allocation10 + $0x214] ss:$36 sps:$4 sm:$0xff]  }
 0x21b   :  { %603 = vmatprep.mubr.bf16.mxu0 %v435_v33  ;;  %v1729_v33 = vld [vmem:[#allocation10 + $0x208] ss:$36 sps:$4 sm:$0xff]  }
 0x21c   :  { %604 = vmatmul.mubr.bf16.vlgmr.msra.gmra.mrb[4].mxu0 %v434_v35  ;;  %v1735_v35 = vld [vmem:[#allocation10 + $0x20] ss:$36 sps:$4 sm:$0xff]  }
 0x21d   :  { %1111 = vmatpush1.bf16.msra.mxu0 %v1639_v34  ;;  %1142 = vmatprep.mubr.bf16.mxu0 %v1894_v0  ;;  %v1732_v34 = vld [vmem:[#allocation10 + $0x210] ss:$36 sps:$4 sm:$0xff]  }
 0x21e   :  { %1112 = vmatprep.subr.bf16.mxu0 %v1647_v36  ;;  %v1895_v36 = vmov 0.0  }
 0x221   :  { %1113 = vmatpush1.bf16.msra.mxu0 %v1645_v37  ;;  %v1736_v37 = vld [vmem:[#allocation10 + $0x68] ss:$36 sps:$4 sm:$0xff]  }
 0x222   :  { %1114 = vmatprep.subr.bf16.mxu0 %v1653_v38  ;;  %v1737_v38 = vld [vmem:[#allocation10 + $0xb0] ss:$36 sps:$4 sm:$0xff]  }
 0x225   :  { %1115 = vmatpush1.bf16.msra.mxu0 %v1651_v39  ;;  %v1738_v39 = vld [vmem:[#allocation10 + $0xf8] ss:$36 sps:$4 sm:$0xff]  }
 0x226   :  { %1116 = vmatprep.subr.bf16.mxu0 %v1659_v40  ;;  %v1739_v40 = vld [vmem:[#allocation10 + $0x140] ss:$36 sps:$4 sm:$0xff]  }
 0x229   :  { %1117 = vmatpush1.bf16.msra.mxu0 %v1657_v41  ;;  %v1740_v41 = vld [vmem:[#allocation10 + $0x188] ss:$36 sps:$4 sm:$0xff]  }
 0x22a   :  { %1118 = vmatprep.subr.bf16.mxu0 %v1665_v42  ;;  %v1741_v42 = vld [vmem:[#allocation10 + $0x1d0] ss:$36 sps:$4 sm:$0xff]  }
 0x22d   :  { %1119 = vmatpush1.bf16.msra.mxu0 %v1663_v43  ;;  %v1742_v43 = vld [vmem:[#allocation10 + $0x218] ss:$36 sps:$4 sm:$0xff]  }
 0x22e   :  { %1120 = vmatprep.subr.bf16.mxu0 %v1671_v44 }
 0x231   :  { %1121 = vmatpush1.bf16.msra.mxu0 %v1669_v45 }
 0x232   :  { %1122 = vmatprep.subr.bf16.mxu0 %v1677_v46 }
 0x235   :  { %1123 = vmatpush1.bf16.msra.mxu0 %v1675_v48 }
 0x236   :  { %1124 = vmatprep.subr.bf16.mxu0 %v1683_v50 }
 0x239   :  { %1125 = vmatpush1.bf16.msra.mxu0 %v1681_v56  ;;  %v711_v56 = vsub.s32 3, %v2023_v52 }
 0x23a   :  { %1192 = vmatprep.subr.bf16.mxu0 %v1689_v58  ;;  %v723_v58 = vsub.s32 6, %v2023_v52 }
 0x2ef   :  { %v1519_v60 = vpop.f32.mrb[4].mxu0 }
 0x2f0   :  { %v1520_v62 = vpop.f32.mrb[5].mxu0 }
 0x2f1   :  { %v1521_v63 = vadd.f32 %v1520_v62, %v1519_v60  ;;  %v1522_v1 = vpop.f32.mrb[6].mxu0  ;;  %v707_v60 = vsub.s32 2, %v2023_v52  ;;  %v727_v62 = vsub.s32 7, %v2023_v52 }
 0x2f2   :  { %v1523_v2 = vpop.f32.mrb[7].mxu0  ;;  %v712_v1 = vrot.slane %v693_v59, %v711_v56 }
 0x2f3   :  { %v606_v3 = vadd.f32 %v1521_v63, %v1413_v61  ;;  %v719_v61 = vsub.s32 5, %v2023_v52  ;;  %v704_v63 = vrot.slane %v693_v59, %v2032_v55  ;;  %v716_v2 = vrot.slane %v693_v59, %v715_v57 }
 0x2f5   :  { %v611_v4 = vmax.f32 %v606_v3, 0.0  ;;  %v724_v3 = vrot.slane %v693_v59, %v723_v58 }
 0x2f7   :  { %v2046_v7 = vpack.c.bf16 %v611_v4, %v611_v4  ;;  %v708_v4 = vrot.slane %v693_v59, %v707_v60 }
 0x2f9   :  { %1143 = vmatmul.mubr.bf16.vlgmr.msra.gmra.mrb[8].mxu0 %v2046_v7  ;;  %1184 = vmatmul.mubr.bf16.vlgmr.msra.gmra.mrb[4].mxu1 %v2046_v7 }
 0x2fa   :  { %1193 = vmatpush1.bf16.msra.mxu0 %v1687_v5  ;;  %1234 = vmatpush1.bf16.msra.mxu1 %v1690_v6  ;;  %v720_v5 = vrot.slane %v693_v59, %v719_v61  ;;  %v728_v6 = vrot.slane %v693_v59, %v727_v62 }
 0x2fb   :  { %1194 = vmatprep.subr.bf16.mxu0 %v1695_v8  ;;  %1235 = vmatprep.subr.bf16.mxu1 %v1698_v9 }
 0x2fc   :  { %1224 = vmatprep.mubr.bf16.mxu0 %v1894_v0  ;;  %1265 = vmatprep.mubr.bf16.mxu1 %v1894_v0  ;;  %v1714_v0 = vld [vmem:[#allocation10 + $0x138] ss:$36 sps:$4 sm:$0xff]  }
 0x2fe   :  { %1195 = vmatpush1.bf16.msra.mxu0 %v1693_v10  ;;  %1236 = vmatpush1.bf16.msra.mxu1 %v1696_v11 }
 0x2ff   :  { %1196 = vmatprep.subr.bf16.mxu0 %v1701_v12  ;;  %1237 = vmatprep.subr.bf16.mxu1 %v1704_v13 }
 0x302   :  { %1197 = vmatpush1.bf16.msra.mxu0 %v1699_v14  ;;  %1238 = vmatpush1.bf16.msra.mxu1 %v1702_v15 }
 0x303   :  { %1198 = vmatprep.subr.bf16.mxu0 %v1707_v16  ;;  %1239 = vmatprep.subr.bf16.mxu1 %v1710_v17 }
 0x306   :  { %1199 = vmatpush1.bf16.msra.mxu0 %v1705_v18  ;;  %1240 = vmatpush1.bf16.msra.mxu1 %v1708_v19 }
 0x307   :  { %1200 = vmatprep.subr.bf16.mxu0 %v1713_v20  ;;  %1241 = vmatprep.subr.bf16.mxu1 %v1716_v21 }
 0x30a   :  { %1201 = vmatpush1.bf16.msra.mxu0 %v1711_v22  ;;  %1242 = vmatpush1.bf16.msra.mxu1 %v1714_v0 }
 0x30b   :  { %1202 = vmatprep.subr.bf16.mxu0 %v1719_v23  ;;  %1243 = vmatprep.subr.bf16.mxu1 %v1722_v24 }
 0x30e   :  { %1203 = vmatpush1.bf16.msra.mxu0 %v1717_v25  ;;  %1244 = vmatpush1.bf16.msra.mxu1 %v1720_v26 }
 0x30f   :  { %1204 = vmatprep.subr.bf16.mxu0 %v1725_v27  ;;  %1245 = vmatprep.subr.bf16.mxu1 %v1728_v28 }
 0x312   :  { %1205 = vmatpush1.bf16.msra.mxu0 %v1723_v29  ;;  %1246 = vmatpush1.bf16.msra.mxu1 %v1726_v30 }
 0x313   :  { %1206 = vmatprep.subr.bf16.mxu0 %v1731_v31  ;;  %1247 = vmatprep.subr.bf16.mxu1 %v1734_v32  ;;  %v1430_v31 = vld [vmem:[%s2093_s8 + $0x8] ss:$0 sm:$0xff]  ;;  %s1897_s8 = smov [#allocation11]  }
 0x314   :  { %s1365_s13 = sshll.u32 %s1897_s8, 4  ;;  %s1366_s13 = int_to_ptr.vmem [resolvable:$true] %s1365_s13 }
 0x315   :  { %s1853_s14 = scalar_lea.vmem %s1366_s13, 128  ;;  %p1858_p13 = scmp.lt.s32.totalorder %s1366_s13, %s1366_s13 }
 0x316   :  { %1207 = vmatpush1.bf16.msra.mxu0 %v1729_v33  ;;  %1248 = vmatpush1.bf16.msra.mxu1 %v1732_v34  ;;  %p1854_p12 = scmp.ne.s32.totalorder %s1366_s13, %s1853_s14  ;;  %p1859_p0 = scmp.lt.s32.totalorder %s1853_s14, %s1853_s14 }
 0x317   :  { %1534 = vmatprep.subr.bf16.mxu0 %v1895_v36 }
 0x318   :  { %p1860_p1 = por %p1859_p0, %p1858_p13 }
 0x319   :  { %1225 = vmatmul.mubr.bf16.vlgmr.msra.gmra.mrb[12].mxu0 %v2046_v7  ;;  %1266 = vmatmul.mubr.bf16.vlgmr.msra.gmra.mrb[8].mxu1 %v2046_v7 }
 0x31a   :  { %1535 = vmatpush3.bf16.msra.mxu0 %v1735_v35  ;;  %1550 = vmatprep.mubr.msk.bf16.mxu0 %vm1896_vm1, %v1895_v36  ;;  %p1861_p2 = pnand %p1860_p1, %p1854_p12 }
 0x31b   :  { %1536 = vmatprep.subr.bf16.mxu0 %v1895_v36 }
 0x31e   :  { %1537 = vmatpush3.bf16.msra.mxu0 %v1736_v37 }
 0x31f   :  { %1538 = vmatprep.subr.bf16.mxu0 %v1895_v36 }
 0x322   :  { %1539 = vmatpush3.bf16.msra.mxu0 %v1737_v38 }
 0x323   :  { %1540 = vmatprep.subr.bf16.mxu0 %v1895_v36 }
 0x326   :  { %1541 = vmatpush3.bf16.msra.mxu0 %v1738_v39 }
 0x327   :  { %1542 = vmatprep.subr.bf16.mxu0 %v1895_v36 }
 0x32a   :  { %1543 = vmatpush3.bf16.msra.mxu0 %v1739_v40 }
 0x32b   :  { %1544 = vmatprep.subr.bf16.mxu0 %v1895_v36 }
 0x32e   :  { %1545 = vmatpush3.bf16.msra.mxu0 %v1740_v41 }
 0x32f   :  { %1546 = vmatprep.subr.bf16.mxu0 %v1895_v36 }
 0x332   :  { %1547 = vmatpush3.bf16.msra.mxu0 %v1741_v42 }
 0x333   :  { %1548 = vmatprep.subr.bf16.mxu0 %v1895_v36 }
 0x336   :  { %1549 = vmatpush3.bf16.msra.mxu0 %v1742_v43 }
 0x339   :  { %1551 = vmatmul.mubr.bf16.vlgmr.msra.gmra.mrb[16].mxu0 %v2046_v7 }
 0x3cc   :  { %v2055_v44 = vpop.f32.mrb[8].mxu0  ;;  %v1185_v45 = vpop.f32.mrb[4].mxu1 }
 0x3cd   :  { %v1146_v46 = vpop.f32.mrb[9].mxu0  ;;  %v1187_v47 = vpop.f32.mrb[5].mxu1  ;;  %v1186_v15 = vadd.f32 %v1185_v45, %v708_v4  ;;  %v1315_v45 = vand.u32 127, %v108_v51 }
 0x3ce   :  { %v1148_v48 = vpop.f32.mrb[10].mxu0  ;;  %v1189_v49 = vpop.f32.mrb[6].mxu1  ;;  %v1147_v9 = vadd.f32 %v1146_v46, %v704_v63  ;;  %v1188_v10 = vadd.f32 %v1187_v47, %v712_v1  ;;  %v700_v46 = vrot.slane %v693_v59, %v2026_v53 }
 0x3cf   :  { %v1149_v50 = vpop.f32.mrb[11].mxu0  ;;  %v1190_v54 = vpop.f32.mrb[7].mxu1  ;;  %vm1321_vm2 = vcmp.eq.s32.totalorder %v1315_v45, 40  ;;  %vm1328_vm3 = vcmp.eq.s32.totalorder %v1315_v45, 41  ;;  %vm1335_vm4 = vcmp.eq.s32.totalorder %v1315_v45, 42  ;;  %vm1342_vm5 = vcmp.eq.s32.totalorder %v1315_v45, 43 }
 0x3d0   :  { %v1145_v48 = vadd.f32 %v2055_v44, %v700_v46  ;;  %vm1349_vm6 = vcmp.eq.s32.totalorder %v1315_v45, 44  ;;  %vm1356_vm7 = vcmp.eq.s32.totalorder %v1315_v45, 45 }
 0x3ec   :  { %v1226_v7 = vpop.f32.mrb[12].mxu0  ;;  %v1267_v8 = vpop.f32.mrb[8].mxu1 }
 0x3ed   :  { %v1227_v11 = vadd.f32 %v1226_v7, %v716_v2  ;;  %v1268_v12 = vadd.f32 %v1267_v8, %v724_v3  ;;  %v1228_v13 = vpop.f32.mrb[13].mxu0  ;;  %v1269_v14 = vpop.f32.mrb[9].mxu1 }
 0x3ee   :  { %v1229_v16 = vadd.f32 %v1228_v13, %v720_v5  ;;  %v1270_v17 = vadd.f32 %v1269_v14, %v728_v6  ;;  %v1230_v52 = vpop.f32.mrb[14].mxu0  ;;  %v1271_v18 = vpop.f32.mrb[10].mxu1 }
 0x3ef   :  { %v1231_v55 = vpop.f32.mrb[15].mxu0  ;;  %v1272_v19 = vpop.f32.mrb[11].mxu1  ;;  %v1338_v20 = vmul.f32 %v1268_v12, %v1188_v10  ;;  %v1316_v21 = vmul.f32 %v1268_v12, %v1147_v9  ;;  %v1345_v22 = vmul.f32 %v1268_v12, %v1227_v11 }
 0x3f0   :  { %v1337_v0 = vmul.f32 %v1270_v17, %v1186_v15  ;;  %v1317_v23 = vmul.f32 %v1229_v16, %v1186_v15  ;;  %v1323_v24 = vmul.f32 %v1270_v17, %v1147_v9  ;;  %v1324_v25 = vmul.f32 %v1229_v16, %v1188_v10 }
 0x3f1   :  { %v1331_v26 = vmul.f32 %v1229_v16, %v1227_v11  ;;  %v1352_v27 = vmul.f32 %v1270_v17, %v1227_v11 }
 0x3f2   :  { %v1339_v28 = vsub.f32 %v1337_v0, %v1338_v20  ;;  %v1318_v29 = vsub.f32 %v1316_v21, %v1317_v23  ;;  %v1325_v30 = vsub.f32 %v1323_v24, %v1324_v25 }
 0x3f4   :  { %1340 = vadd.xlane.f32.xlu1 %v1339_v28  ;;  %1319 = vadd.xlane.f32.xlu0 %v1318_v29 }
 0x3f8   :  { %1326 = vadd.xlane.f32.xlu0 %v1325_v30 }
 0x40c   :  { %v1308_v32 = vpop.f32.mrb[16].mxu0 }
 0x40d   :  { %v1309_v33 = vadd.f32 %v1430_v31, %v1308_v32  ;;  %v1552_v34 = vpop.f32.mrb[17].mxu0 }
 0x40e   :  { %v1311_v35 = vpop.f32.mrb[18].mxu0 }
 0x40f   :  { %v1553_v36 = vpop.f32.mrb[19].mxu0  ;;  %v1330_v37 = vmul.f32 %v1309_v33, %v1147_v9  ;;  %v1344_v38 = vmul.f32 %v1309_v33, %v1186_v15  ;;  %v1351_v39 = vmul.f32 %v1309_v33, %v1188_v10 }
 0x411   :  { %v1332_v40 = vsub.f32 %v1330_v37, %v1331_v26  ;;  %v1346_v41 = vsub.f32 %v1344_v38, %v1345_v22  ;;  %v1353_v42 = vsub.f32 %v1351_v39, %v1352_v27 }
 0x413   :  { %1333 = vadd.xlane.f32.xlu1 %v1332_v40  ;;  %1347 = vadd.xlane.f32.xlu0 %v1346_v41 }
 0x417   :  { %1354 = vadd.xlane.f32.xlu1 %v1353_v42 }
 0x481   :  { %v1320_v43 = vpop.xlane.xlu0 %1319  ;;  %v1341_v47 = vpop.xlane.xlu1 %1340 }
 0x482   :  { %v1322_v50 = vsel %vm1321_vm2, %v1320_v43, %v1145_v48 }
 0x485   :  { %v1327_v49 = vpop.xlane.xlu0 %1326 }
 0x486   :  { %v1329_v54 = vsel %vm1328_vm3, %v1327_v49, %v1322_v50 }
 0x4a0   :  { %v1334_v56 = vpop.xlane.xlu1 %1333  ;;  %v1348_v58 = vpop.xlane.xlu0 %1347 }
 0x4a1   :  { %v1336_v57 = vsel %vm1335_vm4, %v1334_v56, %v1329_v54 }
 0x4a2   :  { %v1343_v60 = vsel %vm1342_vm5, %v1341_v47, %v1336_v57 }
 0x4a3   :  { %v1350_v51 = vsel %vm1349_vm6, %v1348_v58, %v1343_v60 }
 0x4a4   :  { %v1355_v53 = vpop.xlane.xlu1 %1354 }
 0x4a5   :  { %v1357_v59 = vsel %vm1356_vm7, %v1355_v53, %v1350_v51 }
 0x4a6   :  { %1358 = vst [vmem:[#allocation11] sm:$0xff] %v1357_v59 }
 0x4a7   :  { %1864 = shalt.err (!%p1861_p2)
}
 0x4a8   :  { %s1865_s16 = scalar_lea.hbm %s2094_s9, 128 }
 0x4a9   :  { %p1866_p3 = scmp.ne.s32.totalorder %s2094_s9, %s1865_s16  ;;  %p1869_p4 = scmp.lt.u32.totalorder %s1865_s16, %s2094_s9 }
 0x4ab   :  { %p1871_p5 = pnand %p1869_p4, %p1866_p3 }
 0x4ad   :  { %1874 = shalt.err (!%p1871_p5)
}
 0x4ae   :  { %1368 = dma.vmem_to_hbm [thread:$0]  %s1366_s13, 128, %s2094_s9, [#allocation4]  }
 0x4af   :  { %1881 = dma.done.wait [#allocation4], 128  }
 0x4b0   :  { %1882 = vsyncadd [#allocation4], 4294967168 }
 0x4b1   :  { %1372 = vsyncpa [#allocation3], 1 }
 0x4b2   :  { %1373 = vsyncpa [#allocation6], 1 }
 0x4b3   :  { %1374 = vsyncpa [#allocation9], 1 }
 0x4b4   :  { %1375 = vsyncpa [#allocation4], 1 }

</bundles_post_ra>
